<compile_context>
chip_gen: v5e
topology: v5e:2x2
jax: 0.10.0
libtpu: 0.0.40
codegen_flags: <defaults>
</compile_context>

<pallas_src>
import functools
import math

import jax
import jax.numpy as jnp
from jax.experimental import pallas as pl
from jax.experimental.pallas import tpu as pltpu


def _self_attention_kernel(x_ref, w_ref, b_ref, o_ref, *, scale):
    Bt, S, Hp = x_ref.shape

    # Fused q/k/v projection: one (Bt*S, Hp) x (Hp, 3*Hp) MXU matmul, bf16
    # operands, f32 accumulation, bias added once in f32.
    # (reshape is a free layout reinterpret when S is a sublane multiple)
    x2 = x_ref[...].reshape(Bt * S, Hp).astype(jnp.bfloat16)
    qkv = jnp.dot(x2, w_ref[...], preferred_element_type=jnp.float32) + b_ref[...]

    # Static 128-aligned column slices (no tile-crossing relayouts).
    q3 = (qkv[:, :Hp] * scale).reshape(Bt, S, Hp).astype(jnp.bfloat16)  # scale folded into q
    k3 = qkv[:, Hp:2 * Hp].reshape(Bt, S, Hp).astype(jnp.bfloat16)
    v3 = qkv[:, 2 * Hp:].reshape(Bt, S, Hp).astype(jnp.bfloat16)

    # Attention scores: batched contraction over the hidden dim of BOTH
    # operands (no explicit k transpose through the XLU).
    scores = jnp.einsum("bqd,bkd->bqk", q3, k3,
                        preferred_element_type=jnp.float32)        # (Bt, S, S)

    # Numerically stable softmax pieces.
    m = jnp.max(scores, axis=-1, keepdims=True)
    e = jnp.exp(scores - m)                                        # (Bt, S, S)
    denom = jnp.sum(e, axis=-1)                                    # (Bt, S)

    # mean_q softmax(scores) == (recip(denom)/S) @ e  (exact): MXU contraction
    # instead of a full (Bt,S,S) VPU multiply + XLU sublane-sum.
    w_q = (pl.reciprocal(denom, approx=True) * (1.0 / S)).reshape(Bt, 1, S)
    attn_mean = jnp.einsum("boq,bqk->bok",
                           w_q.astype(jnp.bfloat16), e.astype(jnp.bfloat16),
                           preferred_element_type=jnp.float32)     # (Bt, 1, S)

    # mean_q(attn) @ v  (S-fold cheaper than attn @ v followed by the mean).
    out = jnp.einsum("bok,bkh->boh",
                     attn_mean.astype(jnp.bfloat16), v3,
                     preferred_element_type=jnp.float32)           # (Bt, 1, Hp)

    # One lane-dense (block_b, Hp) store per grid step.
    o_ref[0] = out[:, 0, :].astype(o_ref.dtype)


def self_attention_pallas(x, wq, bq, wk, bk, wv, bv, *, block_b=None):
    """x: (B, S, H); weights (H, H) pre-transposed; biases (H,). Returns (B, H)."""
    B, S, H = x.shape
    Hp = max(128, ((H + 127) // 128) * 128)     # lane-dense hidden dim
    pad = Hp - H

    # ---- parameter prep (one-time; folds to constants under jit) ------------
    def pad_w(w):
        return jnp.pad(w, ((0, pad), (0, pad))) if pad else w

    def pad_b(b):
        return jnp.pad(b, (0, pad)) if pad else b

    # Packed QKV weight (Hp, 3*Hp) in bf16; bias kept f32 (added post-matmul).
    w_qkv = jnp.concatenate([pad_w(wq), pad_w(wk), pad_w(wv)], axis=1).astype(jnp.bfloat16)
    b_qkv = jnp.concatenate([pad_b(bq), pad_b(bk), pad_b(bv)]).reshape(1, 3 * Hp).astype(jnp.float32)
    x_in = jnp.pad(x, ((0, 0), (0, 0), (0, pad))) if pad else x   # zero-pad H (exact)

    # ---- VMEM budget drives block_b and vmem_limit_bytes --------------------
    try:
        vmem_phys = int(pltpu.get_tpu_info().vmem_capacity_bytes)
    except Exception:
        vmem_phys = 64 << 20                      # conservative (v7x per-core)
    budget = min(int(vmem_phys * 0.75), 96 << 20)      # ~48 MiB v7x, ~96 MiB v5e/v6e
    vmem_limit = int(min(vmem_phys, budget + (16 << 20)))

    def step_bytes(bb):
        f32, bf16 = 4, 2
        x_blk = 2 * bb * S * Hp * f32                        # double-buffered x block
        acts = bb * S * (Hp * bf16 + 3 * Hp * (f32 + bf16))  # x2(bf16) + qkv f32 + q/k/v bf16
        attn = bb * S * S * (2 * f32 + bf16)                 # scores + e (f32) + e(bf16)
        wgt = 2 * (Hp * 3 * Hp * bf16)                       # weights (worst-case double-buffer)
        bias = 2 * 3 * Hp * f32
        o_blk = 2 * bb * Hp * f32
        return x_blk + acts + attn + wgt + bias + o_blk

    if block_b is None:
        max_bb = B if B < 2 else B // 2   # keep >= 2 grid steps (v7x has 2 TCs)
        block_b = 1
        for cand in range(max_bb, 0, -1):
            if B % cand == 0 and step_bytes(cand) <= budget:
                block_b = cand
                break
    assert B % block_b == 0, (B, block_b)
    # TODO(synk): for very large S (block_b=1 scores exceed VMEM), tile the
    # attention over keys with an online (flash-style) softmax instead of the
    # full (block_b, S, S) scores buffer.

    kernel = functools.partial(_self_attention_kernel, scale=1.0 / math.sqrt(H))
    n_steps = B // block_b

    def build(single_buffer_weights):
        def const_spec(shape):
            if single_buffer_weights:
                # Grid-invariant blocks: no need for double-buffering VMEM.
                return pl.BlockSpec(shape, lambda b: (0, 0),
                                    pipeline_mode=pl.Buffered(1))
            return pl.BlockSpec(shape, lambda b: (0, 0))

        grid_spec = pltpu.PrefetchScalarGridSpec(
            num_scalar_prefetch=0,
            grid=(n_steps,),
            in_specs=[
                pl.BlockSpec((block_b, S, Hp), lambda b: (b, 0, 0)),  # x block
                const_spec((Hp, 3 * Hp)),                             # packed W_qkv
                const_spec((1, 3 * Hp)),                              # packed bias
            ],
            # 3-D output so the block's last two dims equal the full array dims
            # (keeps the (8,128) rule satisfied for any block_b); memory layout
            # is identical to (B, Hp) row-major.
            out_specs=pl.BlockSpec((1, block_b, Hp), lambda b: (b, 0, 0)),
        )
        return pl.pallas_call(
            kernel,
            out_shape=jax.ShapeDtypeStruct((n_steps, block_b, Hp), x.dtype),
            grid_spec=grid_spec,
            compiler_params=pltpu.CompilerParams(
                dimension_semantics=("parallel",),
                vmem_limit_bytes=vmem_limit),
        )

    try:
        out = build(True)(x_in, w_qkv, b_qkv)
    except Exception:
        # pipeline_mode=pl.Buffered(1) unsupported on this JAX/Mosaic version:
        # fall back to default (double-buffered) invariant blocks.
        out = build(False)(x_in, w_qkv, b_qkv)

    out = out.reshape(B, Hp)
    return out[:, :H] if pad else out


def self_attention_ref(x, wq, bq, wk, bk, wv, bv):
    """Pure-JAX f32 reference mirroring the PyTorch forward."""
    q = x @ wq + bq
    k = x @ wk + bk
    v = x @ wv + bv
    scores = jnp.einsum("bsh,bth->bst", q, k) / math.sqrt(x.shape[-1])
    attn = jax.nn.softmax(scores, axis=-1)
    attended = jnp.einsum("bst,bth->bsh", attn, v)
    return attended.mean(axis=1)


if __name__ == "__main__":
    B, S, H = 2, 8, 32
    key = jax.random.PRNGKey(0)
    kx, kq, kbq, kk, kbk, kv, kbv = jax.random.split(key, 7)

    # Deterministic synthetic parameters (nn.Linear-like scale: U(-1/sqrt(H), 1/sqrt(H))).
    bound = 1.0 / math.sqrt(H)
    x = jax.random.normal(kx, (B, S, H), dtype=jnp.float32)
    wq = jax.random.uniform(kq, (H, H), jnp.float32, -bound, bound)
    bq = jax.random.uniform(kbq, (H,), jnp.float32, -bound, bound)
    wk = jax.random.uniform(kk, (H, H), jnp.float32, -bound, bound)
    bk = jax.random.uniform(kbk, (H,), jnp.float32, -bound, bound)
    wv = jax.random.uniform(kv, (H, H), jnp.float32, -bound, bound)
    bv = jax.random.uniform(kbv, (H,), jnp.float32, -bound, bound)

    out = self_attention_pallas(x, wq, bq, wk, bk, wv, bv)
    out = jax.block_until_ready(out)

    ref = self_attention_ref(x, wq, bq, wk, bk, wv, bv)
    assert out.shape == (B, H), out.shape
    # Tolerance relaxed for bf16 MXU operands + approx EUP reciprocal.
    assert jnp.allclose(out, ref, atol=2e-2, rtol=2e-2), \
        f"max err {jnp.max(jnp.abs(out - ref))}"

    print("KERNEL_OK")
</pallas_src>

<mosaic_0001>
module attributes {stable_mosaic.version = 11 : i64} {
  func.func @_self_attention_kernel(%arg0: i32, %arg1: memref<1x8x128xf32, #tpu.memory_space<vmem>>, %arg2: memref<128x384xbf16, #tpu.memory_space<vmem>>, %arg3: memref<1x384xf32, #tpu.memory_space<vmem>>, %arg4: memref<1x1x128xf32, #tpu.memory_space<vmem>>) attributes {dimension_semantics = [#tpu.dimension_semantics<parallel>], iteration_bounds = array<i64: 2>, scalar_prefetch = 0 : i64, scratch_operands = 0 : i64, tpu.core_type = #tpu.core_type<tc>, window_params = [{transform_indices = @transform_0, window_bounds = array<i64: 1, 8, 128>}, {pipeline_mode = #tpu.pipeline_mode<synchronous>, transform_indices = @transform_1, window_bounds = array<i64: 128, 384>}, {pipeline_mode = #tpu.pipeline_mode<synchronous>, transform_indices = @transform_2, window_bounds = array<i64: 1, 384>}, {transform_indices = @transform_3, window_bounds = array<i64: 1, 1, 128>}]} {
    %c0 = arith.constant 0 : index
    %c0_0 = arith.constant 0 : index
    %c0_1 = arith.constant 0 : index
    %0 = vector.load %arg1[%c0, %c0_0, %c0_1] : memref<1x8x128xf32, #tpu.memory_space<vmem>>, vector<1x8x128xf32>
    %1 = vector.shape_cast %0 : vector<1x8x128xf32> to vector<8x128xf32>
    %2 = arith.truncf %1 : vector<8x128xf32> to vector<8x128xbf16>
    %c0_2 = arith.constant 0 : index
    %c0_3 = arith.constant 0 : index
    %3 = vector.load %arg2[%c0_2, %c0_3] : memref<128x384xbf16, #tpu.memory_space<vmem>>, vector<128x384xbf16>
    %cst = arith.constant dense<0.000000e+00> : vector<8x384xf32>
    %4 = tpu.matmul %2, %3, %cst {dimension_numbers = #tpu.dot_dimension_numbers<[1], [0], [0], [1], [0, 0, 1, 1], [], []>} : vector<8x128xbf16>, vector<128x384xbf16>, vector<8x384xf32> -> vector<8x384xf32>
    %c0_4 = arith.constant 0 : index
    %c0_5 = arith.constant 0 : index
    %5 = vector.load %arg3[%c0_4, %c0_5] : memref<1x384xf32, #tpu.memory_space<vmem>>, vector<1x384xf32>
    %6 = vector.broadcast %5 : vector<1x384xf32> to vector<8x384xf32>
    %7 = arith.addf %4, %6 : vector<8x384xf32>
    %8 = vector.extract_strided_slice %7 {offsets = [0, 0], sizes = [8, 128], strides = [1, 1]} : vector<8x384xf32> to vector<8x128xf32>
    %cst_6 = arith.constant 0.176776692 : f32
    %9 = vector.broadcast %cst_6 : f32 to vector<8x128xf32>
    %10 = arith.mulf %8, %9 : vector<8x128xf32>
    %11 = vector.shape_cast %10 : vector<8x128xf32> to vector<1x8x128xf32>
    %12 = arith.truncf %11 : vector<1x8x128xf32> to vector<1x8x128xbf16>
    %13 = vector.extract_strided_slice %7 {offsets = [0, 128], sizes = [8, 128], strides = [1, 1]} : vector<8x384xf32> to vector<8x128xf32>
    %14 = vector.shape_cast %13 : vector<8x128xf32> to vector<1x8x128xf32>
    %15 = arith.truncf %14 : vector<1x8x128xf32> to vector<1x8x128xbf16>
    %16 = vector.extract_strided_slice %7 {offsets = [0, 256], sizes = [8, 128], strides = [1, 1]} : vector<8x384xf32> to vector<8x128xf32>
    %17 = vector.shape_cast %16 : vector<8x128xf32> to vector<1x8x128xf32>
    %18 = arith.truncf %17 : vector<1x8x128xf32> to vector<1x8x128xbf16>
    "tpu.trace_start"() <{level = 10 : i32, message = "bqd,bkd->bqk"}> : () -> ()
    %cst_7 = arith.constant dense<0.000000e+00> : vector<1x8x8xf32>
    %19 = tpu.matmul %12, %15, %cst_7 {dimension_numbers = #tpu.dot_dimension_numbers<[2], [2], [1], [1], [0, 0, 0, 1, 1, 1], [0], [0]>} : vector<1x8x128xbf16>, vector<1x8x128xbf16>, vector<1x8x8xf32> -> vector<1x8x8xf32>
    "tpu.trace_stop"() : () -> ()
    %cst_8 = arith.constant dense<0xFF800000> : vector<1x8xf32>
    %20 = vector.multi_reduction <maximumf>, %19, %cst_8 [2] : vector<1x8x8xf32> to vector<1x8xf32>
    %21 = vector.shape_cast %20 : vector<1x8xf32> to vector<1x8x1xf32>
    %22 = vector.broadcast %21 : vector<1x8x1xf32> to vector<1x8x8xf32>
    %23 = arith.subf %19, %22 : vector<1x8x8xf32>
    %24 = math.exp %23 : vector<1x8x8xf32>
    %cst_9 = arith.constant dense<0.000000e+00> : vector<1x8xf32>
    %25 = vector.multi_reduction <add>, %24, %cst_9 [2] : vector<1x8x8xf32> to vector<1x8xf32>
    %26 = tpu.reciprocal %25 {approx = true} : vector<1x8xf32> -> vector<1x8xf32>
    %cst_10 = arith.constant 1.250000e-01 : f32
    %27 = vector.broadcast %cst_10 : f32 to vector<1x8xf32>
    %28 = arith.mulf %26, %27 : vector<1x8xf32>
    %29 = vector.shape_cast %28 : vector<1x8xf32> to vector<1x1x8xf32>
    %30 = arith.truncf %29 : vector<1x1x8xf32> to vector<1x1x8xbf16>
    %31 = arith.truncf %24 : vector<1x8x8xf32> to vector<1x8x8xbf16>
    "tpu.trace_start"() <{level = 10 : i32, message = "boq,bqk->bok"}> : () -> ()
    %cst_11 = arith.constant dense<0.000000e+00> : vector<1x1x8xf32>
    %32 = tpu.matmul %30, %31, %cst_11 {dimension_numbers = #tpu.dot_dimension_numbers<[2], [1], [1], [2], [0, 0, 0, 1, 1, 2], [0], [0]>} : vector<1x1x8xbf16>, vector<1x8x8xbf16>, vector<1x1x8xf32> -> vector<1x1x8xf32>
    "tpu.trace_stop"() : () -> ()
    %33 = arith.truncf %32 : vector<1x1x8xf32> to vector<1x1x8xbf16>
    "tpu.trace_start"() <{level = 10 : i32, message = "bok,bkh->boh"}> : () -> ()
    %cst_12 = arith.constant dense<0.000000e+00> : vector<1x1x128xf32>
    %34 = tpu.matmul %33, %18, %cst_12 {dimension_numbers = #tpu.dot_dimension_numbers<[2], [1], [1], [2], [0, 0, 0, 1, 1, 2], [0], [0]>} : vector<1x1x8xbf16>, vector<1x8x128xbf16>, vector<1x1x128xf32> -> vector<1x1x128xf32>
    "tpu.trace_stop"() : () -> ()
    %35 = vector.shape_cast %34 : vector<1x1x128xf32> to vector<1x128xf32>
    %c0_13 = arith.constant 0 : index
    %c0_14 = arith.constant 0 : index
    %c0_15 = arith.constant 0 : index
    %36 = vector.load %arg4[%c0_13, %c0_14, %c0_15] : memref<1x1x128xf32, #tpu.memory_space<vmem>>, vector<1x1x128xf32>
    %37 = vector.shape_cast %36 : vector<1x1x128xf32> to vector<1x128xf32>
    %38 = vector.shape_cast %35 : vector<1x128xf32> to vector<1x1x128xf32>
    tpu.vector_store %arg4[%c0_13, %c0_14, %c0_15], %38 {strides = array<i32>} : memref<1x1x128xf32, #tpu.memory_space<vmem>>, vector<1x1x128xf32>,
    return
  }
  func.func @transform_0(%arg0: i32) -> (i32, i32, i32) {
    %c0_i32 = arith.constant 0 : i32
    %c0_i32_0 = arith.constant 0 : i32
    %c0_i32_1 = arith.constant 0 : i32
    return %arg0, %c0_i32, %c0_i32_0 : i32, i32, i32
  }
  func.func @transform_1(%arg0: i32) -> (i32, i32) {
    %c0_i32 = arith.constant 0 : i32
    %c0_i32_0 = arith.constant 0 : i32
    %c0_i32_1 = arith.constant 0 : i32
    return %c0_i32, %c0_i32_0 : i32, i32
  }
  func.func @transform_2(%arg0: i32) -> (i32, i32) {
    %c0_i32 = arith.constant 0 : i32
    %c0_i32_0 = arith.constant 0 : i32
    %c0_i32_1 = arith.constant 0 : i32
    return %c0_i32, %c0_i32_0 : i32, i32
  }
  func.func @transform_3(%arg0: i32) -> (i32, i32, i32) {
    %c0_i32 = arith.constant 0 : i32
    %c0_i32_0 = arith.constant 0 : i32
    %c0_i32_1 = arith.constant 0 : i32
    return %arg0, %c0_i32, %c0_i32_0 : i32, i32, i32
  }
}

module attributes {stable_mosaic.version = 11 : i64} {
  func.func @_self_attention_kernel(%arg0: i32, %arg1: memref<1x8x128xf32, #tpu.memory_space<vmem>>, %arg2: memref<128x384xbf16, #tpu.memory_space<vmem>>, %arg3: memref<1x384xf32, #tpu.memory_space<vmem>>, %arg4: memref<1x1x128xf32, #tpu.memory_space<vmem>>) attributes {dimension_semantics = [#tpu.dimension_semantics<parallel>], iteration_bounds = array<i64: 2>, scalar_prefetch = 0 : i64, scratch_operands = 0 : i64, tpu.core_type = #tpu.core_type<tc>, window_params = [{transform_indices = @transform_0, window_bounds = array<i64: 1, 8, 128>}, {pipeline_mode = #tpu.pipeline_mode<synchronous>, transform_indices = @transform_1, window_bounds = array<i64: 128, 384>}, {pipeline_mode = #tpu.pipeline_mode<synchronous>, transform_indices = @transform_2, window_bounds = array<i64: 1, 384>}, {transform_indices = @transform_3, window_bounds = array<i64: 1, 1, 128>}]} {
    %c0 = arith.constant 0 : index
    %c0_0 = arith.constant 0 : index
    %c0_1 = arith.constant 0 : index
    %0 = vector.load %arg1[%c0, %c0_0, %c0_1] : memref<1x8x128xf32, #tpu.memory_space<vmem>>, vector<1x8x128xf32>
    %1 = vector.shape_cast %0 : vector<1x8x128xf32> to vector<8x128xf32>
    %2 = arith.truncf %1 : vector<8x128xf32> to vector<8x128xbf16>
    %c0_2 = arith.constant 0 : index
    %c0_3 = arith.constant 0 : index
    %3 = vector.load %arg2[%c0_2, %c0_3] : memref<128x384xbf16, #tpu.memory_space<vmem>>, vector<128x384xbf16>
    %cst = arith.constant dense<0.000000e+00> : vector<8x384xf32>
    %4 = tpu.matmul %2, %3, %cst {dimension_numbers = #tpu.dot_dimension_numbers<[1], [0], [0], [1], [0, 0, 1, 1], [], []>} : vector<8x128xbf16>, vector<128x384xbf16>, vector<8x384xf32> -> vector<8x384xf32>
    %c0_4 = arith.constant 0 : index
    %c0_5 = arith.constant 0 : index
    %5 = vector.load %arg3[%c0_4, %c0_5] : memref<1x384xf32, #tpu.memory_space<vmem>>, vector<1x384xf32>
    %6 = vector.broadcast %5 : vector<1x384xf32> to vector<8x384xf32>
    %7 = arith.addf %4, %6 : vector<8x384xf32>
    %8 = vector.extract_strided_slice %7 {offsets = [0, 0], sizes = [8, 128], strides = [1, 1]} : vector<8x384xf32> to vector<8x128xf32>
    %cst_6 = arith.constant 0.176776692 : f32
    %9 = vector.broadcast %cst_6 : f32 to vector<8x128xf32>
    %10 = arith.mulf %8, %9 : vector<8x128xf32>
    %11 = vector.shape_cast %10 : vector<8x128xf32> to vector<1x8x128xf32>
    %12 = arith.truncf %11 : vector<1x8x128xf32> to vector<1x8x128xbf16>
    %13 = vector.extract_strided_slice %7 {offsets = [0, 128], sizes = [8, 128], strides = [1, 1]} : vector<8x384xf32> to vector<8x128xf32>
    %14 = vector.shape_cast %13 : vector<8x128xf32> to vector<1x8x128xf32>
    %15 = arith.truncf %14 : vector<1x8x128xf32> to vector<1x8x128xbf16>
    %16 = vector.extract_strided_slice %7 {offsets = [0, 256], sizes = [8, 128], strides = [1, 1]} : vector<8x384xf32> to vector<8x128xf32>
    %17 = vector.shape_cast %16 : vector<8x128xf32> to vector<1x8x128xf32>
    %18 = arith.truncf %17 : vector<1x8x128xf32> to vector<1x8x128xbf16>
    "tpu.trace_start"() <{level = 10 : i32, message = "bqd,bkd->bqk"}> : () -> ()
    %cst_7 = arith.constant dense<0.000000e+00> : vector<1x8x8xf32>
    %19 = tpu.matmul %12, %15, %cst_7 {dimension_numbers = #tpu.dot_dimension_numbers<[2], [2], [1], [1], [0, 0, 0, 1, 1, 1], [0], [0]>} : vector<1x8x128xbf16>, vector<1x8x128xbf16>, vector<1x8x8xf32> -> vector<1x8x8xf32>
    "tpu.trace_stop"() : () -> ()
    %cst_8 = arith.constant dense<0xFF800000> : vector<1x8xf32>
    %20 = vector.multi_reduction <maximumf>, %19, %cst_8 [2] : vector<1x8x8xf32> to vector<1x8xf32>
    %21 = vector.shape_cast %20 : vector<1x8xf32> to vector<1x8x1xf32>
    %22 = vector.broadcast %21 : vector<1x8x1xf32> to vector<1x8x8xf32>
    %23 = arith.subf %19, %22 : vector<1x8x8xf32>
    %24 = math.exp %23 : vector<1x8x8xf32>
    %cst_9 = arith.constant dense<0.000000e+00> : vector<1x8xf32>
    %25 = vector.multi_reduction <add>, %24, %cst_9 [2] : vector<1x8x8xf32> to vector<1x8xf32>
    %26 = tpu.reciprocal %25 {approx = true} : vector<1x8xf32> -> vector<1x8xf32>
    %cst_10 = arith.constant 1.250000e-01 : f32
    %27 = vector.broadcast %cst_10 : f32 to vector<1x8xf32>
    %28 = arith.mulf %26, %27 : vector<1x8xf32>
    %29 = vector.shape_cast %28 : vector<1x8xf32> to vector<1x1x8xf32>
    %30 = arith.truncf %29 : vector<1x1x8xf32> to vector<1x1x8xbf16>
    %31 = arith.truncf %24 : vector<1x8x8xf32> to vector<1x8x8xbf16>
    "tpu.trace_start"() <{level = 10 : i32, message = "boq,bqk->bok"}> : () -> ()
    %cst_11 = arith.constant dense<0.000000e+00> : vector<1x1x8xf32>
    %32 = tpu.matmul %30, %31, %cst_11 {dimension_numbers = #tpu.dot_dimension_numbers<[2], [1], [1], [2], [0, 0, 0, 1, 1, 2], [0], [0]>} : vector<1x1x8xbf16>, vector<1x8x8xbf16>, vector<1x1x8xf32> -> vector<1x1x8xf32>
    "tpu.trace_stop"() : () -> ()
    %33 = arith.truncf %32 : vector<1x1x8xf32> to vector<1x1x8xbf16>
    "tpu.trace_start"() <{level = 10 : i32, message = "bok,bkh->boh"}> : () -> ()
    %cst_12 = arith.constant dense<0.000000e+00> : vector<1x1x128xf32>
    %34 = tpu.matmul %33, %18, %cst_12 {dimension_numbers = #tpu.dot_dimension_numbers<[2], [1], [1], [2], [0, 0, 0, 1, 1, 2], [0], [0]>} : vector<1x1x8xbf16>, vector<1x8x128xbf16>, vector<1x1x128xf32> -> vector<1x1x128xf32>
    "tpu.trace_stop"() : () -> ()
    %35 = vector.shape_cast %34 : vector<1x1x128xf32> to vector<1x128xf32>
    %c0_13 = arith.constant 0 : index
    %c0_14 = arith.constant 0 : index
    %c0_15 = arith.constant 0 : index
    %36 = vector.load %arg4[%c0_13, %c0_14, %c0_15] : memref<1x1x128xf32, #tpu.memory_space<vmem>>, vector<1x1x128xf32>
    %37 = vector.shape_cast %36 : vector<1x1x128xf32> to vector<1x128xf32>
    %38 = vector.shape_cast %35 : vector<1x128xf32> to vector<1x1x128xf32>
    tpu.vector_store %arg4[%c0_13, %c0_14, %c0_15], %38 {strides = array<i32>} : memref<1x1x128xf32, #tpu.memory_space<vmem>>, vector<1x1x128xf32>,
    return
  }
  func.func @transform_0(%arg0: i32) -> (i32, i32, i32) {
    %c0_i32 = arith.constant 0 : i32
    %c0_i32_0 = arith.constant 0 : i32
    %c0_i32_1 = arith.constant 0 : i32
    return %arg0, %c0_i32, %c0_i32_0 : i32, i32, i32
  }
  func.func @transform_1(%arg0: i32) -> (i32, i32) {
    %c0_i32 = arith.constant 0 : i32
    %c0_i32_0 = arith.constant 0 : i32
    %c0_i32_1 = arith.constant 0 : i32
    return %c0_i32, %c0_i32_0 : i32, i32
  }
  func.func @transform_2(%arg0: i32) -> (i32, i32) {
    %c0_i32 = arith.constant 0 : i32
    %c0_i32_0 = arith.constant 0 : i32
    %c0_i32_1 = arith.constant 0 : i32
    return %c0_i32, %c0_i32_0 : i32, i32
  }
  func.func @transform_3(%arg0: i32) -> (i32, i32, i32) {
    %c0_i32 = arith.constant 0 : i32
    %c0_i32_0 = arith.constant 0 : i32
    %c0_i32_1 = arith.constant 0 : i32
    return %arg0, %c0_i32, %c0_i32_0 : i32, i32, i32
  }
}

</mosaic_0001>

<bundles_post_ra>
// kernel: tpu_custom_call.1
= control target key start
LH: loop header
LB: loop body
LE: loop exit
PB: predicated region body
PF: predicated region fallthrough
CT: control target
= control target key end

     0   :  { %8 = vsyncpa [#allocation3], 0  ;;  %s1166_s0 = inlined_call_operand.hbm [shape: f32[2,8,128], index: 0, kind: input, shape index: {}]   ;;  %s1167_s1 = inlined_call_operand.hbm [shape: bf16[128,384], index: 1, kind: input, shape index: {}]   ;;  %s1168_s2 = inlined_call_operand.hbm [shape: f32[1,384], index: 2, kind: input, shape index: {}]   ;;  %s1169_s3 = inlined_call_operand.hbm [shape: f32[2,1,128], index: 3, kind: output, shape index: {}]  }
   0x1   :  { %10 = vsyncpa [#allocation3 + $0x1], 0 }
   0x2   :  { %11 = vsyncpa [#allocation6], 0 }
   0x3   :  { %12 = vsyncpa [#allocation4], 0 }
   0x4   :  { %14 = vsyncpa [#allocation4 + $0x1], 0  ;;  %s1001_s12 = smov 0   ;;  %s1003_s13 = smov 0  }
   0x5   :  { %s1005_s14 = smov 0   ;;  %s1007_s15 = smov 0  }
   0x6 LB: > { %s130_s18 = sshll.u32 %s1167_s1, 4  ;;  %s1025_s19 = sadd.s32 4294967295, %s975_s15   ;;  %s975_s15 = sphi %s1007_s15, %s1180_s15   ;;  %s971_s14 = sphi %s1005_s14, %s1179_s14   ;;  %s967_s13 = sphi %s1003_s13, %s1178_s13   ;;  %s963_s12 = sphi %s1001_s12, %s1177_s12   ;;  %s131_s18 = int_to_ptr.hbm [resolvable:$true] %s130_s18 }
   0x7   : > { %p607_p0 = scmp.ge.s32.totalorder %s975_s15, 1  ;;  %p41_p1 = scmp.eq.s32.totalorder %s1025_s19, 0 }
   0x8   : > { %p119_p2 = scmp.lt.s32.totalorder %s975_s15, 3  ;;  %s977_s21 = smov [#allocation5]  }
   0x9   : > { %s132_s22 = sshll.u32 %s977_s21, 4  ;;  %s145_s25 = sshll.u32 %s1168_s2, 4  ;;  %s133_s22 = int_to_ptr.vmem [resolvable:$true] %s132_s22  ;;  %s146_s25 = int_to_ptr.hbm [resolvable:$true] %s145_s25 }
   0xa   : > { %p1030_p3 = pnand %p607_p0, %p119_p2  ;;  %s978_s26 = smov [#allocation7]  }
   0xb   : > { %s147_s27 = sshll.u32 %s978_s26, 4  ;;  %s979_s28 = smov 192   ;;  %s148_s27 = int_to_ptr.vmem [resolvable:$true] %s147_s27 }
   0xc   : > { %p754_p4 = pneg %p1030_p3  ;;  %s980_s29 = smov 12  }
   0xd   : > { %s606_s30 = sadd.s32 4294967294, %s975_s15   ;;  %s1044_s4 = sadd.s32 1, %s975_s15  }
   0xe   : > { %p755_p6 = pnand %p754_p4, %p41_p1  ;;  %s24_s5 = ssub.s32 %s975_s15, %s1044_s4 }
   0xf   : > { %s27_s6 = sadd.s32 1, %s971_s14  ;;  %p25_p7 = scmp.eq.s32.totalorder %s24_s5, 0 }
  0x10   : > { %757 = dma.hbm_to_vmem [thread:$0]  (!%p755_p6), %s131_s18, 3072, %s133_s22, [#allocation6], %s979_s28, %s979_s28, %s980_s29  }
  0x11   : > { %760 = dma.hbm_to_vmem [thread:$0]  (!%p755_p6), %s146_s25, 48, %s148_s27, [#allocation6]  }
  0x12   : > { %p34_p8 = scmp.ne.s32.totalorder %s971_s14, %s967_s13  ;;  %p35_p9 = scmp.eq.s32.totalorder %s975_s15, 0 }
  0x13   : > { %p40_p10 = scmp.ne.s32.totalorder %s967_s13, %s963_s12  ;;  %p106_p13 = scmp.eq.s32.totalorder %s1025_s19, 1 }
  0x14   : > { %s1055_s7 = scalar_select %p25_p7, %s971_s14, %s27_s6  }
  0x15   : > { %p1057_p11 = por %p35_p9, %p34_p8  ;;  %p1063_p12 = por %p41_p1, %p40_p10 }
  0x16   : > { %p112_p0 = scmp.eq.s32.totalorder %s606_s30, 1  ;;  %p771_p2 = scmp.lt.s32.totalorder %s975_s15, 2 }
  0x17   : > { %s158_s10 = sand.u32 1, %s971_s14   ;;  %p1070_p4 = por %p106_p13, %p34_p8 }
  0x18   : > { %p1074_p6 = por %p112_p0, %p40_p10  ;;  %s611_s17 = sshll.u32 %s158_s10, 3 }
  0x19   : > { %s612_s18 = sshll.u32 %s975_s15, 3  ;;  %s162_s24 = scalar_lea.vmem [#allocation2], %s611_s17 }
  0x1a   : > { %s166_s23 = scalar_lea.hbm %s1166_s0, %s612_s18  ;;  %s170_s25 = sshll.u32 %s162_s24, 4  ;;  %s171_s25 = int_to_ptr.vmem [resolvable:$true] %s170_s25 }
  0x1b   : > { %s168_s26 = sshll.u32 %s166_s23, 4  ;;  %p1084_p7 = pnand %p771_p2, %p1057_p11  ;;  %s169_s26 = int_to_ptr.hbm [resolvable:$true] %s168_s26 }
  0x1c   : > { %s159_s28 = scalar_lea.sflag [#allocation3], %s158_s10  ;;  %s875_s29 = sshra.s32 %s169_s26, 4  ;;  %s876_s29 = int_to_ptr.hbm [resolvable:$true] %s875_s29 }
  0x1d   : > { %s877_s30 = scalar_lea.hbm %s876_s29, 8  ;;  %p879_p9 = pneg %p1084_p7 }
  0x1e   : > { %p878_p8 = scmp.ne.s32.totalorder %s876_s29, %s877_s30  ;;  %s882_s17 = scalar_lea.hbm %s1166_s0, 16 }
  0x1f   : > { %p883_p11 = scmp.lt.s32.totalorder %s876_s29, %s1166_s0  ;;  %p884_p0 = scmp.lt.s32.totalorder %s882_s17, %s877_s30 }
  0x20   : > { %p880_p10 = pnand %p879_p9, %p878_p8 }
  0x21   : > { %p885_p2 = por %p884_p0, %p883_p11 }
  0x22   : > { %p881_p13 = pneg %p880_p10 }
  0x24   : > { %p886_p5 = pnand %p885_p2, %p881_p13 }
  0x26   : > { %889 = shalt.err (!%p886_p5)
}
  0x27   : > { %764 = dma.hbm_to_vmem [thread:$0]  (!%p1084_p7), %s169_s26, 128, %s171_s25, %s159_s28  }
  0x28   : > { %179 = sbr.rel (%p1030_p3) target bundleno = 890 (0x37a), region = 32  ;;  %s1101_s10 = sand.u32 (!%p1030_p3), 1, %s967_s13  }
  0x29   : > { %s614_s21 = sshll.u32 (!%p1030_p3), %s1101_s10, 3  ;;  %s182_s22 = scalar_lea.sflag (!%p1030_p3), [#allocation3], %s1101_s10 }
  0x2a   : > { %s1105_s23 = scalar_lea.vmem (!%p1030_p3), [#allocation2], %s614_s21 }
  0x2d   : > { %950 = dma.done.wait (%p1063_p12), %s182_s22, 128  }
  0x2e   : > { %952 = vsyncadd (%p1063_p12), %s182_s22, 4294967168 }
  0x2f   : > { %954 = dma.done.wait (%p41_p1), [#allocation6], 3120  }
  0x30   : > { %956 = vsyncadd (%p41_p1), [#allocation6], 4294964176  ;;  %v703_v0 = vld [vmem:[#allocation5 + $0xa8] sm:$0xf]  ;;  %v740_v1 = vld [vmem:[#allocation5 + $0xb0] sm:$0xf0]  ;;  %s517_s24 = scalar_lea.hbm %s1169_s3, %s1025_s19 }
  0x31   : > { %v739_v2 = vld [vmem:[#allocation5 + $0xac] sm:$0xf]  ;;  %v704_v3 = vor.u32 %v740_v1, %v703_v0  ;;  %v705_v4 = vld [vmem:[#allocation5 + $0xb4] sm:$0xf0]  ;;  %v691_v5 = vld [vmem:[#allocation5 + $0x90] sm:$0xf] }
  0x32   : > { %v737_v6 = vld [vmem:[#allocation5 + $0x98] sm:$0xf0]  ;;  %v708_v7 = vor.u32 %v739_v2, %v705_v4  ;;  %v736_v8 = vld [vmem:[#allocation5 + $0x94] sm:$0xf]  ;;  %v693_v9 = vld [vmem:[#allocation5 + $0x9c] sm:$0xf0] }
  0x33   : > { %389 = vmatpush.bf16.msra.mxu0 %v704_v3  ;;  %v692_v10 = vor.u32 %v737_v6, %v691_v5  ;;  %v696_v11 = vor.u32 %v736_v8, %v693_v9  ;;  %v679_v12 = vld [vmem:[#allocation5 + $0x78] sm:$0xf]  ;;  %v734_v13 = vld [vmem:[#allocation5 + $0x80] sm:$0xf0]  ;;  %v733_v14 = vld [vmem:[#allocation5 + $0x7c] sm:$0xf] }
  0x34   : > { %402 = vmatpush.bf16.msra.mxu1 %v708_v7  ;;  %v681_v15 = vld [vmem:[#allocation5 + $0x84] sm:$0xf0]  ;;  %v680_v16 = vor.u32 %v734_v13, %v679_v12  ;;  %v667_v18 = vld [vmem:[#allocation5 + $0x60] sm:$0xf]  ;;  %v731_v19 = vld [vmem:[#allocation5 + $0x68] sm:$0xf0] }
  0x35   : > { %v684_v17 = vor.u32 %v733_v14, %v681_v15  ;;  %v730_v20 = vld [vmem:[#allocation5 + $0x64] sm:$0xf]  ;;  %v669_v21 = vld [vmem:[#allocation5 + $0x6c] sm:$0xf0]  ;;  %v668_v22 = vor.u32 %v731_v19, %v667_v18  ;;  %v655_v24 = vld [vmem:[#allocation5 + $0x48] sm:$0xf] }
  0x36   : > { %v672_v23 = vor.u32 %v730_v20, %v669_v21  ;;  %v728_v25 = vld [vmem:[#allocation5 + $0x50] sm:$0xf0]  ;;  %v727_v26 = vld [vmem:[#allocation5 + $0x4c] sm:$0xf]  ;;  %v657_v27 = vld [vmem:[#allocation5 + $0x54] sm:$0xf0] }
  0x37   : > { %390 = vmatpush.bf16.msra.mxu0 %v692_v10  ;;  %v656_v28 = vor.u32 %v728_v25, %v655_v24  ;;  %v660_v29 = vor.u32 %v727_v26, %v657_v27  ;;  %v643_v30 = vld [vmem:[#allocation5 + $0x30] sm:$0xf]  ;;  %v725_v31 = vld [vmem:[#allocation5 + $0x38] sm:$0xf0]  ;;  %v724_v32 = vld [vmem:[#allocation5 + $0x34] sm:$0xf] }
  0x38   : > { %403 = vmatpush.bf16.msra.mxu1 %v696_v11  ;;  %v645_v33 = vld [vmem:[#allocation5 + $0x3c] sm:$0xf0]  ;;  %v644_v34 = vor.u32 %v725_v31, %v643_v30  ;;  %v631_v36 = vld [vmem:[#allocation5 + $0x18] sm:$0xf]  ;;  %v722_v37 = vld [vmem:[#allocation5 + $0x20] sm:$0xf0] }
  0x39   : > { %v648_v35 = vor.u32 %v724_v32, %v645_v33  ;;  %v721_v38 = vld [vmem:[#allocation5 + $0x1c] sm:$0xf]  ;;  %v633_v39 = vld [vmem:[#allocation5 + $0x24] sm:$0xf0]  ;;  %v632_v40 = vor.u32 %v722_v37, %v631_v36  ;;  %v619_v42 = vld [vmem:[#allocation5] sm:$0xf] }
  0x3a   : > { %v636_v41 = vor.u32 %v721_v38, %v633_v39  ;;  %v719_v43 = vld [vmem:[#allocation5 + $0x8] sm:$0xf0]  ;;  %v718_v44 = vld [vmem:[#allocation5 + $0x4] sm:$0xf]  ;;  %v621_v45 = vld [vmem:[#allocation5 + $0xc] sm:$0xf0] }
  0x3b   : > { %391 = vmatpush.bf16.msra.mxu0 %v680_v16  ;;  %v620_v46 = vor.u32 %v719_v43, %v619_v42  ;;  %v219_v47 = vld [vmem:[%s1105_s23] sm:$0xff]  ;;  %v624_v48 = vor.u32 %v718_v44, %v621_v45  ;;  %v1120_v50 = vld [vmem:[#allocation7] sm:$0x7]  ;;  %vm445_vm0 = vcmask 64512   ;;  %v738_v5 = vld [vmem:[#allocation5 + $0xa0] sm:$0xf0] }
  0x3c   : > { %404 = vmatpush.bf16.msra.mxu1 %v684_v17  ;;  %v1116_v49 = vpack.c.bf16 %v219_v47, %v219_v47  ;;  %v255_v51 = vperm.slane %v1120_v50, 0  ;;  %v256_v52 = vperm.slane %v1120_v50, 1  ;;  %v711_v1 = vld [vmem:[#allocation5 + $0xb0] sm:$0xf]  ;;  %v741_v2 = vld [vmem:[#allocation5 + $0xb8] sm:$0xf0] }
  0x3d   : > { %v699_v3 = vld [vmem:[#allocation5 + $0x98] sm:$0xf]  ;;  %v712_v4 = vor.u32 %v741_v2, %v711_v1  ;;  %v687_v7 = vld [vmem:[#allocation5 + $0x80] sm:$0xf]  ;;  %v735_v8 = vld [vmem:[#allocation5 + $0x88] sm:$0xf0] }
  0x3e   : > { %v700_v6 = vor.u32 %v738_v5, %v699_v3  ;;  %v688_v9 = vor.u32 %v735_v8, %v687_v7  ;;  %v675_v10 = vld [vmem:[#allocation5 + $0x68] sm:$0xf]  ;;  %v732_v11 = vld [vmem:[#allocation5 + $0x70] sm:$0xf0]  ;;  %v663_v13 = vld [vmem:[#allocation5 + $0x50] sm:$0xf] }
  0x3f   : > { %392 = vmatpush.bf16.msra.mxu0 %v668_v22  ;;  %415 = vmatpush.bf16.msra.mxu2 %v712_v4  ;;  %v676_v12 = vor.u32 %v732_v11, %v675_v10  ;;  %v729_v14 = vld [vmem:[#allocation5 + $0x58] sm:$0xf0]  ;;  %v651_v16 = vld [vmem:[#allocation5 + $0x38] sm:$0xf]  ;;  %v726_v17 = vld [vmem:[#allocation5 + $0x40] sm:$0xf0] }
  0x40   : > { %405 = vmatpush.bf16.msra.mxu1 %v672_v23  ;;  %v664_v15 = vor.u32 %v729_v14, %v663_v13  ;;  %v652_v20 = vor.u32 %v726_v17, %v651_v16  ;;  %v639_v22 = vld [vmem:[#allocation5 + $0x20] sm:$0xf]  ;;  %v723_v23 = vld [vmem:[#allocation5 + $0x28] sm:$0xf0]  ;;  %v627_v25 = vld [vmem:[#allocation5 + $0x8] sm:$0xf] }
  0x41   : > { %v640_v24 = vor.u32 %v723_v23, %v639_v22  ;;  %v720_v26 = vld [vmem:[#allocation5 + $0x10] sm:$0xf0]  ;;  %vm470_vm1 = vcmask 1043456   ;;  %s217_s25 = scalar_lea.vmem [#allocation8], %s1101_s10  ;;  %s521_s27 = sshll.u32 %s517_s24, 4  ;;  %s522_s27 = int_to_ptr.hbm [resolvable:$true] %s521_s27 }
  0x42   : > { %v628_v27 = vor.u32 %v720_v26, %v627_v25  ;;  %s519_s26 = sshll.u32 %s217_s25, 4  ;;  %s509_s28 = scalar_lea.sflag [#allocation4], %s1101_s10  ;;  %s520_s26 = int_to_ptr.vmem [resolvable:$true] %s519_s26 }
  0x43   : > { %393 = vmatpush.bf16.msra.mxu0 %v656_v28  ;;  %416 = vmatpush.bf16.msra.mxu2 %v700_v6  ;;  %s919_s29 = sshra.s32 %s522_s27, 4  ;;  %s925_s17 = scalar_lea.hbm %s1169_s3, 2  ;;  %s920_s29 = int_to_ptr.hbm [resolvable:$true] %s919_s29 }
  0x44   : > { %406 = vmatpush.bf16.msra.mxu1 %v660_v29  ;;  %s921_s30 = scalar_lea.hbm %s920_s29, 1  ;;  %p926_p12 = scmp.lt.s32.totalorder %s920_s29, %s1169_s3 }
  0x45   : > { %p922_p1 = scmp.ne.s32.totalorder %s920_s29, %s921_s30  ;;  %p927_p7 = scmp.lt.s32.totalorder %s925_s17, %s921_s30 }
  0x47   : > { %394 = vmatpush.bf16.msra.mxu0 %v644_v34  ;;  %417 = vmatpush.bf16.msra.mxu2 %v688_v9  ;;  %v463_v34 = vlaneseq  ;;  %p923_p3 = pnand %p922_p1, %p1070_p4  ;;  %p928_p8 = por %p927_p7, %p926_p12 }
  0x48   : > { %407 = vmatpush.bf16.msra.mxu1 %v648_v35 }
  0x49   : > { %v464_v37 = vand.u32 127, %v463_v34  ;;  %p924_p5 = pneg %p923_p3 }
  0x4b   : > { %395 = vmatpush.bf16.msra.mxu0 %v632_v40  ;;  %418 = vmatpush.bf16.msra.mxu2 %v676_v12  ;;  %p929_p9 = pnand %p928_p8, %p924_p5 }
  0x4c   : > { %408 = vmatpush.bf16.msra.mxu1 %v636_v41  ;;  %v257_v41 = vperm.slane %v1120_v50, 2 }
  0x4f   : > { %396 = vmatpush.bf16.msra.mxu0 %v620_v46  ;;  %419 = vmatpush.bf16.msra.mxu2 %v664_v15 }
  0x50   : > { %409 = vmatpush.bf16.msra.mxu1 %v624_v48 }
  0x52   : > { %397 = vmatmul.bf16.vlgmr.msra.gmra.mxu0 %v1116_v49 }
  0x53   : > { %410 = vmatmul.bf16.vlgmr.msra.gmra.mxu1 %v1116_v49  ;;  %420 = vmatpush.bf16.msra.mxu2 %v652_v20 }
  0x57   : > { %421 = vmatpush.bf16.msra.mxu2 %v640_v24 }
  0x5b   : > { %422 = vmatpush.bf16.msra.mxu2 %v628_v27 }
  0x5e   : > { %423 = vmatmul.bf16.vlgmr.msra.gmra.mxu2 %v1116_v49 }
  0xcf   : > { %v398_v53 = vpop.f32.mrf.mxu0 }
  0xd0   : > { %v399_v54 = vadd.f32 %v398_v53, %v255_v51  ;;  %v411_v55 = vpop.f32.mrf.mxu1 }
  0xd1   : > { %v412_v56 = vadd.f32 %v411_v55, %v256_v52 }
  0xd2   : > { %v428_v58 = vmul.f32 0.17677669, %v399_v54 }
  0xd3   : > { %v430_v57 = vpack.c.bf16 %v412_v56, %v412_v56 }
  0xd4   : > { %v429_v61 = vpack.c.bf16 %v428_v58, %v428_v58 }
  0xd5   : > { %439 = vmatpush.bf16.xpose.msra.mxu3 %v430_v57 }
  0xd7   : > { %v400_v59 = vpop.f32.mrf.mxu0 }
  0xd8   : > { %v413_v60 = vpop.f32.mrf.mxu1 }
  0xdc   : > { %440 = vmatmul.bf16.vlgmr.msra.gmra.mxu3 %v429_v61 }
  0xe1   : > { %v424_v43 = vpop.f32.mrf.mxu2 }
  0xe2   : > { %v425_v44 = vadd.f32 %v424_v43, %v257_v41 }
  0xe4   : > { %v431_v45 = vpack.c.bf16 %v425_v44, %v425_v44 }
  0xe6   : > { %v492_v46 = vsel %vm470_vm1, %v431_v45, 0 }
  0xe9   : > { %v426_v47 = vpop.f32.mrf.mxu2 }
 0x15f   : > { %v441_v62 = vpop.f32.mrf.mxu3 }
 0x160   : > { %v446_v63 = vsel %vm445_vm0, %v441_v62, -inf }
 0x161   : > { %447 = vmax.xlane.f32.xlu0 %v446_v63 }
 0x167   : > { %v443_v0 = vpop.f32.mrf.mxu3 }
 0x1d4   : > { %v448_v18 = vpop.xlane.xlu0 %447 }
 0x1d5   : > { %v449_v19 = vsub.f32 %v441_v62, %v448_v18 }
 0x1d7   : > { %v450_v21 = vmul.f32 1.442695, %v449_v19 }
 0x1d9   : > { %811 = vpow2.f32 %v450_v21 }
 0x1df   : > { %v812_v28 = vpop.eup %811 }
 0x1e0   : > { %v452_v29 = vsel %vm445_vm0, %v812_v28, 0.0  ;;  %v458_v30 = vpack.c.bf16 %v812_v28, %v812_v28 }
 0x1e1   : > { %453 = vadd.xlane.f32.xlu0 %v452_v29 }
 0x1e2   : > { %v472_v31 = vsel %vm470_vm1, %v458_v30, 0 }
 0x1e3   : > { %481 = vmatpush.bf16.msrb.mxu3 %v472_v31 }
 0x1e7   : > { %501 = vmatpush.bf16.msra.mxu3 %v492_v46 }
 0x254   : > { %v454_v32 = vpop.xlane.xlu0 %453 }
 0x255   : > { %813 = vrcp.f32 %v454_v32 }
 0x25b   : > { %v814_v33 = vpop.eup %813 }
 0x25c   : > { %v456_v35 = vmul.f32 0.125, %v814_v33 }
 0x25e   : > { %v457_v36 = vpack.c.bf16 %v456_v35, %v456_v35 }
 0x260   : > { %v460_v38 = vunpack.c.l.b16 %v457_v36 }
 0x262   : > { %v713_v39 = vunpack.i.l.s16 %v460_v38 }
 0x264   : > { %v465_v40 = vperm.slane %v713_v39, %v464_v37 }
 0x266   : > { %v466_v42 = vpack.c.b16 %v465_v40, %v465_v40 }
 0x268   : > { %714 = vmatmul.msk.bf16.vlgmr.msrb.gmra.mxu3 %vm445_vm0, %v466_v42 }
 0x2eb   : > { %v483_v48 = vpop.f32.mrf.mxu3 }
 0x2ec   : > { %v487_v49 = vpack.c.bf16 %v483_v48, %v483_v48 }
 0x2ee   : > { %715 = vmatmul.msk.bf16.vlgmr.msra.gmra.mxu3 %vm445_vm0, %v487_v49 }
 0x2f3   : > { %v485_v51 = vpop.f32.mrf.mxu3 }
 0x371   : > { %v503_v50 = vpop.f32.mrf.mxu3 }
 0x372   : > { %507 = vst [vmem:[%s217_s25] sm:$0x1] %v503_v50 }
 0x373   : > { %932 = shalt.err (!%p929_p9)
}
 0x374   : > { %752 = dma.vmem_to_hbm [thread:$0]  (%p1070_p4), %s520_s26, 16, %s522_s27, %s509_s28  }
 0x379   : > { %v505_v52 = vpop.f32.mrf.mxu3 }
 0x37a PF: > { %s533_s8 = sand.u32 1, %s963_s12   ;;  %p1176_p10 = scmp.ge.s32.totalorder %s975_s15, 2 }
 0x37b   : > { %s534_s10 = scalar_lea.sflag [#allocation4], %s533_s8 }
 0x37c   : > { %p766_p13 = pnand %p1176_p10, %p1074_p6 }
 0x37e   : > { %p767_p11 = pneg %p766_p13 }
 0x380   : > { %958 = dma.done.wait (%p767_p11), %s534_s10, 16  }
 0x381   : > { %960 = vsyncadd (%p767_p11), %s534_s10, 4294967280  ;;  %p17_p0 = scmp.ge.s32.totalorder %s1044_s4, 4   ;;  %s1177_s12 = smov %s967_s13 }
 0x382   : > { %s1178_s13 = smov %s971_s14  ;;  %s1179_s14 = smov %s1055_s7 }
 0x383   : > { %s1180_s15 = smov %s1044_s4  ;;  %19 = sbr.rel (!%p17_p0) target bundleno = 6 (0x6), region = 85 }
 0x388   :  { %539 = vsyncpa [#allocation3], 1 }
 0x389   :  { %541 = vsyncpa [#allocation3 + $0x1], 1 }
 0x38a   :  { %542 = vsyncpa [#allocation6], 1 }
 0x38b   :  { %543 = vsyncpa [#allocation4], 1 }
 0x38c   :  { %545 = vsyncpa [#allocation4 + $0x1], 1 }

// kernel: tpu_custom_call.1
= control target key start
LH: loop header
LB: loop body
LE: loop exit
PB: predicated region body
PF: predicated region fallthrough
CT: control target
= control target key end

     0   :  { %8 = vsyncpa [#allocation3], 0  ;;  %s1166_s0 = inlined_call_operand.hbm [shape: f32[2,8,128], index: 0, kind: input, shape index: {}]   ;;  %s1167_s1 = inlined_call_operand.hbm [shape: bf16[128,384], index: 1, kind: input, shape index: {}]   ;;  %s1168_s2 = inlined_call_operand.hbm [shape: f32[1,384], index: 2, kind: input, shape index: {}]   ;;  %s1169_s3 = inlined_call_operand.hbm [shape: f32[2,1,128], index: 3, kind: output, shape index: {}]  }
   0x1   :  { %10 = vsyncpa [#allocation3 + $0x1], 0 }
   0x2   :  { %11 = vsyncpa [#allocation6], 0 }
   0x3   :  { %12 = vsyncpa [#allocation4], 0 }
   0x4   :  { %14 = vsyncpa [#allocation4 + $0x1], 0  ;;  %s1001_s12 = smov 0   ;;  %s1003_s13 = smov 0  }
   0x5   :  { %s1005_s14 = smov 0   ;;  %s1007_s15 = smov 0  }
   0x6 LB: > { %s130_s18 = sshll.u32 %s1167_s1, 4  ;;  %s1025_s19 = sadd.s32 4294967295, %s975_s15   ;;  %s975_s15 = sphi %s1007_s15, %s1180_s15   ;;  %s971_s14 = sphi %s1005_s14, %s1179_s14   ;;  %s967_s13 = sphi %s1003_s13, %s1178_s13   ;;  %s963_s12 = sphi %s1001_s12, %s1177_s12   ;;  %s131_s18 = int_to_ptr.hbm [resolvable:$true] %s130_s18 }
   0x7   : > { %p607_p0 = scmp.ge.s32.totalorder %s975_s15, 1  ;;  %p41_p1 = scmp.eq.s32.totalorder %s1025_s19, 0 }
   0x8   : > { %p119_p2 = scmp.lt.s32.totalorder %s975_s15, 3  ;;  %s977_s21 = smov [#allocation5]  }
   0x9   : > { %s132_s22 = sshll.u32 %s977_s21, 4  ;;  %s145_s25 = sshll.u32 %s1168_s2, 4  ;;  %s133_s22 = int_to_ptr.vmem [resolvable:$true] %s132_s22  ;;  %s146_s25 = int_to_ptr.hbm [resolvable:$true] %s145_s25 }
   0xa   : > { %p1030_p3 = pnand %p607_p0, %p119_p2  ;;  %s978_s26 = smov [#allocation7]  }
   0xb   : > { %s147_s27 = sshll.u32 %s978_s26, 4  ;;  %s979_s28 = smov 192   ;;  %s148_s27 = int_to_ptr.vmem [resolvable:$true] %s147_s27 }
   0xc   : > { %p754_p4 = pneg %p1030_p3  ;;  %s980_s29 = smov 12  }
   0xd   : > { %s606_s30 = sadd.s32 4294967294, %s975_s15   ;;  %s1044_s4 = sadd.s32 1, %s975_s15  }
   0xe   : > { %p755_p6 = pnand %p754_p4, %p41_p1  ;;  %s24_s5 = ssub.s32 %s975_s15, %s1044_s4 }
   0xf   : > { %s27_s6 = sadd.s32 1, %s971_s14  ;;  %p25_p7 = scmp.eq.s32.totalorder %s24_s5, 0 }
  0x10   : > { %757 = dma.hbm_to_vmem [thread:$0]  (!%p755_p6), %s131_s18, 3072, %s133_s22, [#allocation6], %s979_s28, %s979_s28, %s980_s29  }
  0x11   : > { %760 = dma.hbm_to_vmem [thread:$0]  (!%p755_p6), %s146_s25, 48, %s148_s27, [#allocation6]  }
  0x12   : > { %p34_p8 = scmp.ne.s32.totalorder %s971_s14, %s967_s13  ;;  %p35_p9 = scmp.eq.s32.totalorder %s975_s15, 0 }
  0x13   : > { %p40_p10 = scmp.ne.s32.totalorder %s967_s13, %s963_s12  ;;  %p106_p13 = scmp.eq.s32.totalorder %s1025_s19, 1 }
  0x14   : > { %s1055_s7 = scalar_select %p25_p7, %s971_s14, %s27_s6  }
  0x15   : > { %p1057_p11 = por %p35_p9, %p34_p8  ;;  %p1063_p12 = por %p41_p1, %p40_p10 }
  0x16   : > { %p112_p0 = scmp.eq.s32.totalorder %s606_s30, 1  ;;  %p771_p2 = scmp.lt.s32.totalorder %s975_s15, 2 }
  0x17   : > { %s158_s10 = sand.u32 1, %s971_s14   ;;  %p1070_p4 = por %p106_p13, %p34_p8 }
  0x18   : > { %p1074_p6 = por %p112_p0, %p40_p10  ;;  %s611_s17 = sshll.u32 %s158_s10, 3 }
  0x19   : > { %s612_s18 = sshll.u32 %s975_s15, 3  ;;  %s162_s24 = scalar_lea.vmem [#allocation2], %s611_s17 }
  0x1a   : > { %s166_s23 = scalar_lea.hbm %s1166_s0, %s612_s18  ;;  %s170_s25 = sshll.u32 %s162_s24, 4  ;;  %s171_s25 = int_to_ptr.vmem [resolvable:$true] %s170_s25 }
  0x1b   : > { %s168_s26 = sshll.u32 %s166_s23, 4  ;;  %p1084_p7 = pnand %p771_p2, %p1057_p11  ;;  %s169_s26 = int_to_ptr.hbm [resolvable:$true] %s168_s26 }
  0x1c   : > { %s159_s28 = scalar_lea.sflag [#allocation3], %s158_s10  ;;  %s875_s29 = sshra.s32 %s169_s26, 4  ;;  %s876_s29 = int_to_ptr.hbm [resolvable:$true] %s875_s29 }
  0x1d   : > { %s877_s30 = scalar_lea.hbm %s876_s29, 8  ;;  %p879_p9 = pneg %p1084_p7 }
  0x1e   : > { %p878_p8 = scmp.ne.s32.totalorder %s876_s29, %s877_s30  ;;  %s882_s17 = scalar_lea.hbm %s1166_s0, 16 }
  0x1f   : > { %p883_p11 = scmp.lt.s32.totalorder %s876_s29, %s1166_s0  ;;  %p884_p0 = scmp.lt.s32.totalorder %s882_s17, %s877_s30 }
  0x20   : > { %p880_p10 = pnand %p879_p9, %p878_p8 }
  0x21   : > { %p885_p2 = por %p884_p0, %p883_p11 }
  0x22   : > { %p881_p13 = pneg %p880_p10 }
  0x24   : > { %p886_p5 = pnand %p885_p2, %p881_p13 }
  0x26   : > { %889 = shalt.err (!%p886_p5)
}
  0x27   : > { %764 = dma.hbm_to_vmem [thread:$0]  (!%p1084_p7), %s169_s26, 128, %s171_s25, %s159_s28  }
  0x28   : > { %179 = sbr.rel (%p1030_p3) target bundleno = 890 (0x37a), region = 32  ;;  %s1101_s10 = sand.u32 (!%p1030_p3), 1, %s967_s13  }
  0x29   : > { %s614_s21 = sshll.u32 (!%p1030_p3), %s1101_s10, 3  ;;  %s182_s22 = scalar_lea.sflag (!%p1030_p3), [#allocation3], %s1101_s10 }
  0x2a   : > { %s1105_s23 = scalar_lea.vmem (!%p1030_p3), [#allocation2], %s614_s21 }
  0x2d   : > { %950 = dma.done.wait (%p1063_p12), %s182_s22, 128  }
  0x2e   : > { %952 = vsyncadd (%p1063_p12), %s182_s22, 4294967168 }
  0x2f   : > { %954 = dma.done.wait (%p41_p1), [#allocation6], 3120  }
  0x30   : > { %956 = vsyncadd (%p41_p1), [#allocation6], 4294964176  ;;  %v703_v0 = vld [vmem:[#allocation5 + $0xa8] sm:$0xf]  ;;  %v740_v1 = vld [vmem:[#allocation5 + $0xb0] sm:$0xf0]  ;;  %s517_s24 = scalar_lea.hbm %s1169_s3, %s1025_s19 }
  0x31   : > { %v739_v2 = vld [vmem:[#allocation5 + $0xac] sm:$0xf]  ;;  %v704_v3 = vor.u32 %v740_v1, %v703_v0  ;;  %v705_v4 = vld [vmem:[#allocation5 + $0xb4] sm:$0xf0]  ;;  %v691_v5 = vld [vmem:[#allocation5 + $0x90] sm:$0xf] }
  0x32   : > { %v737_v6 = vld [vmem:[#allocation5 + $0x98] sm:$0xf0]  ;;  %v708_v7 = vor.u32 %v739_v2, %v705_v4  ;;  %v736_v8 = vld [vmem:[#allocation5 + $0x94] sm:$0xf]  ;;  %v693_v9 = vld [vmem:[#allocation5 + $0x9c] sm:$0xf0] }
  0x33   : > { %389 = vmatpush.bf16.msra.mxu0 %v704_v3  ;;  %v692_v10 = vor.u32 %v737_v6, %v691_v5  ;;  %v696_v11 = vor.u32 %v736_v8, %v693_v9  ;;  %v679_v12 = vld [vmem:[#allocation5 + $0x78] sm:$0xf]  ;;  %v734_v13 = vld [vmem:[#allocation5 + $0x80] sm:$0xf0]  ;;  %v733_v14 = vld [vmem:[#allocation5 + $0x7c] sm:$0xf] }
  0x34   : > { %402 = vmatpush.bf16.msra.mxu1 %v708_v7  ;;  %v681_v15 = vld [vmem:[#allocation5 + $0x84] sm:$0xf0]  ;;  %v680_v16 = vor.u32 %v734_v13, %v679_v12  ;;  %v667_v18 = vld [vmem:[#allocation5 + $0x60] sm:$0xf]  ;;  %v731_v19 = vld [vmem:[#allocation5 + $0x68] sm:$0xf0] }
  0x35   : > { %v684_v17 = vor.u32 %v733_v14, %v681_v15  ;;  %v730_v20 = vld [vmem:[#allocation5 + $0x64] sm:$0xf]  ;;  %v669_v21 = vld [vmem:[#allocation5 + $0x6c] sm:$0xf0]  ;;  %v668_v22 = vor.u32 %v731_v19, %v667_v18  ;;  %v655_v24 = vld [vmem:[#allocation5 + $0x48] sm:$0xf] }
  0x36   : > { %v672_v23 = vor.u32 %v730_v20, %v669_v21  ;;  %v728_v25 = vld [vmem:[#allocation5 + $0x50] sm:$0xf0]  ;;  %v727_v26 = vld [vmem:[#allocation5 + $0x4c] sm:$0xf]  ;;  %v657_v27 = vld [vmem:[#allocation5 + $0x54] sm:$0xf0] }
  0x37   : > { %390 = vmatpush.bf16.msra.mxu0 %v692_v10  ;;  %v656_v28 = vor.u32 %v728_v25, %v655_v24  ;;  %v660_v29 = vor.u32 %v727_v26, %v657_v27  ;;  %v643_v30 = vld [vmem:[#allocation5 + $0x30] sm:$0xf]  ;;  %v725_v31 = vld [vmem:[#allocation5 + $0x38] sm:$0xf0]  ;;  %v724_v32 = vld [vmem:[#allocation5 + $0x34] sm:$0xf] }
  0x38   : > { %403 = vmatpush.bf16.msra.mxu1 %v696_v11  ;;  %v645_v33 = vld [vmem:[#allocation5 + $0x3c] sm:$0xf0]  ;;  %v644_v34 = vor.u32 %v725_v31, %v643_v30  ;;  %v631_v36 = vld [vmem:[#allocation5 + $0x18] sm:$0xf]  ;;  %v722_v37 = vld [vmem:[#allocation5 + $0x20] sm:$0xf0] }
  0x39   : > { %v648_v35 = vor.u32 %v724_v32, %v645_v33  ;;  %v721_v38 = vld [vmem:[#allocation5 + $0x1c] sm:$0xf]  ;;  %v633_v39 = vld [vmem:[#allocation5 + $0x24] sm:$0xf0]  ;;  %v632_v40 = vor.u32 %v722_v37, %v631_v36  ;;  %v619_v42 = vld [vmem:[#allocation5] sm:$0xf] }
  0x3a   : > { %v636_v41 = vor.u32 %v721_v38, %v633_v39  ;;  %v719_v43 = vld [vmem:[#allocation5 + $0x8] sm:$0xf0]  ;;  %v718_v44 = vld [vmem:[#allocation5 + $0x4] sm:$0xf]  ;;  %v621_v45 = vld [vmem:[#allocation5 + $0xc] sm:$0xf0] }
  0x3b   : > { %391 = vmatpush.bf16.msra.mxu0 %v680_v16  ;;  %v620_v46 = vor.u32 %v719_v43, %v619_v42  ;;  %v219_v47 = vld [vmem:[%s1105_s23] sm:$0xff]  ;;  %v624_v48 = vor.u32 %v718_v44, %v621_v45  ;;  %v1120_v50 = vld [vmem:[#allocation7] sm:$0x7]  ;;  %vm445_vm0 = vcmask 64512   ;;  %v738_v5 = vld [vmem:[#allocation5 + $0xa0] sm:$0xf0] }
  0x3c   : > { %404 = vmatpush.bf16.msra.mxu1 %v684_v17  ;;  %v1116_v49 = vpack.c.bf16 %v219_v47, %v219_v47  ;;  %v255_v51 = vperm.slane %v1120_v50, 0  ;;  %v256_v52 = vperm.slane %v1120_v50, 1  ;;  %v711_v1 = vld [vmem:[#allocation5 + $0xb0] sm:$0xf]  ;;  %v741_v2 = vld [vmem:[#allocation5 + $0xb8] sm:$0xf0] }
  0x3d   : > { %v699_v3 = vld [vmem:[#allocation5 + $0x98] sm:$0xf]  ;;  %v712_v4 = vor.u32 %v741_v2, %v711_v1  ;;  %v687_v7 = vld [vmem:[#allocation5 + $0x80] sm:$0xf]  ;;  %v735_v8 = vld [vmem:[#allocation5 + $0x88] sm:$0xf0] }
  0x3e   : > { %v700_v6 = vor.u32 %v738_v5, %v699_v3  ;;  %v688_v9 = vor.u32 %v735_v8, %v687_v7  ;;  %v675_v10 = vld [vmem:[#allocation5 + $0x68] sm:$0xf]  ;;  %v732_v11 = vld [vmem:[#allocation5 + $0x70] sm:$0xf0]  ;;  %v663_v13 = vld [vmem:[#allocation5 + $0x50] sm:$0xf] }
  0x3f   : > { %392 = vmatpush.bf16.msra.mxu0 %v668_v22  ;;  %415 = vmatpush.bf16.msra.mxu2 %v712_v4  ;;  %v676_v12 = vor.u32 %v732_v11, %v675_v10  ;;  %v729_v14 = vld [vmem:[#allocation5 + $0x58] sm:$0xf0]  ;;  %v651_v16 = vld [vmem:[#allocation5 + $0x38] sm:$0xf]  ;;  %v726_v17 = vld [vmem:[#allocation5 + $0x40] sm:$0xf0] }
  0x40   : > { %405 = vmatpush.bf16.msra.mxu1 %v672_v23  ;;  %v664_v15 = vor.u32 %v729_v14, %v663_v13  ;;  %v652_v20 = vor.u32 %v726_v17, %v651_v16  ;;  %v639_v22 = vld [vmem:[#allocation5 + $0x20] sm:$0xf]  ;;  %v723_v23 = vld [vmem:[#allocation5 + $0x28] sm:$0xf0]  ;;  %v627_v25 = vld [vmem:[#allocation5 + $0x8] sm:$0xf] }
  0x41   : > { %v640_v24 = vor.u32 %v723_v23, %v639_v22  ;;  %v720_v26 = vld [vmem:[#allocation5 + $0x10] sm:$0xf0]  ;;  %vm470_vm1 = vcmask 1043456   ;;  %s217_s25 = scalar_lea.vmem [#allocation8], %s1101_s10  ;;  %s521_s27 = sshll.u32 %s517_s24, 4  ;;  %s522_s27 = int_to_ptr.hbm [resolvable:$true] %s521_s27 }
  0x42   : > { %v628_v27 = vor.u32 %v720_v26, %v627_v25  ;;  %s519_s26 = sshll.u32 %s217_s25, 4  ;;  %s509_s28 = scalar_lea.sflag [#allocation4], %s1101_s10  ;;  %s520_s26 = int_to_ptr.vmem [resolvable:$true] %s519_s26 }
  0x43   : > { %393 = vmatpush.bf16.msra.mxu0 %v656_v28  ;;  %416 = vmatpush.bf16.msra.mxu2 %v700_v6  ;;  %s919_s29 = sshra.s32 %s522_s27, 4  ;;  %s925_s17 = scalar_lea.hbm %s1169_s3, 2  ;;  %s920_s29 = int_to_ptr.hbm [resolvable:$true] %s919_s29 }
  0x44   : > { %406 = vmatpush.bf16.msra.mxu1 %v660_v29  ;;  %s921_s30 = scalar_lea.hbm %s920_s29, 1  ;;  %p926_p12 = scmp.lt.s32.totalorder %s920_s29, %s1169_s3 }
  0x45   : > { %p922_p1 = scmp.ne.s32.totalorder %s920_s29, %s921_s30  ;;  %p927_p7 = scmp.lt.s32.totalorder %s925_s17, %s921_s30 }
  0x47   : > { %394 = vmatpush.bf16.msra.mxu0 %v644_v34  ;;  %417 = vmatpush.bf16.msra.mxu2 %v688_v9  ;;  %v463_v34 = vlaneseq  ;;  %p923_p3 = pnand %p922_p1, %p1070_p4  ;;  %p928_p8 = por %p927_p7, %p926_p12 }
  0x48   : > { %407 = vmatpush.bf16.msra.mxu1 %v648_v35 }
  0x49   : > { %v464_v37 = vand.u32 127, %v463_v34  ;;  %p924_p5 = pneg %p923_p3 }
  0x4b   : > { %395 = vmatpush.bf16.msra.mxu0 %v632_v40  ;;  %418 = vmatpush.bf16.msra.mxu2 %v676_v12  ;;  %p929_p9 = pnand %p928_p8, %p924_p5 }
  0x4c   : > { %408 = vmatpush.bf16.msra.mxu1 %v636_v41  ;;  %v257_v41 = vperm.slane %v1120_v50, 2 }
  0x4f   : > { %396 = vmatpush.bf16.msra.mxu0 %v620_v46  ;;  %419 = vmatpush.bf16.msra.mxu2 %v664_v15 }
  0x50   : > { %409 = vmatpush.bf16.msra.mxu1 %v624_v48 }
  0x52   : > { %397 = vmatmul.bf16.vlgmr.msra.gmra.mxu0 %v1116_v49 }
  0x53   : > { %410 = vmatmul.bf16.vlgmr.msra.gmra.mxu1 %v1116_v49  ;;  %420 = vmatpush.bf16.msra.mxu2 %v652_v20 }
  0x57   : > { %421 = vmatpush.bf16.msra.mxu2 %v640_v24 }
  0x5b   : > { %422 = vmatpush.bf16.msra.mxu2 %v628_v27 }
  0x5e   : > { %423 = vmatmul.bf16.vlgmr.msra.gmra.mxu2 %v1116_v49 }
  0xcf   : > { %v398_v53 = vpop.f32.mrf.mxu0 }
  0xd0   : > { %v399_v54 = vadd.f32 %v398_v53, %v255_v51  ;;  %v411_v55 = vpop.f32.mrf.mxu1 }
  0xd1   : > { %v412_v56 = vadd.f32 %v411_v55, %v256_v52 }
  0xd2   : > { %v428_v58 = vmul.f32 0.17677669, %v399_v54 }
  0xd3   : > { %v430_v57 = vpack.c.bf16 %v412_v56, %v412_v56 }
  0xd4   : > { %v429_v61 = vpack.c.bf16 %v428_v58, %v428_v58 }
  0xd5   : > { %439 = vmatpush.bf16.xpose.msra.mxu3 %v430_v57 }
  0xd7   : > { %v400_v59 = vpop.f32.mrf.mxu0 }
  0xd8   : > { %v413_v60 = vpop.f32.mrf.mxu1 }
  0xdc   : > { %440 = vmatmul.bf16.vlgmr.msra.gmra.mxu3 %v429_v61 }
  0xe1   : > { %v424_v43 = vpop.f32.mrf.mxu2 }
  0xe2   : > { %v425_v44 = vadd.f32 %v424_v43, %v257_v41 }
  0xe4   : > { %v431_v45 = vpack.c.bf16 %v425_v44, %v425_v44 }
  0xe6   : > { %v492_v46 = vsel %vm470_vm1, %v431_v45, 0 }
  0xe9   : > { %v426_v47 = vpop.f32.mrf.mxu2 }
 0x15f   : > { %v441_v62 = vpop.f32.mrf.mxu3 }
 0x160   : > { %v446_v63 = vsel %vm445_vm0, %v441_v62, -inf }
 0x161   : > { %447 = vmax.xlane.f32.xlu0 %v446_v63 }
 0x167   : > { %v443_v0 = vpop.f32.mrf.mxu3 }
 0x1d4   : > { %v448_v18 = vpop.xlane.xlu0 %447 }
 0x1d5   : > { %v449_v19 = vsub.f32 %v441_v62, %v448_v18 }
 0x1d7   : > { %v450_v21 = vmul.f32 1.442695, %v449_v19 }
 0x1d9   : > { %811 = vpow2.f32 %v450_v21 }
 0x1df   : > { %v812_v28 = vpop.eup %811 }
 0x1e0   : > { %v452_v29 = vsel %vm445_vm0, %v812_v28, 0.0  ;;  %v458_v30 = vpack.c.bf16 %v812_v28, %v812_v28 }
 0x1e1   : > { %453 = vadd.xlane.f32.xlu0 %v452_v29 }
 0x1e2   : > { %v472_v31 = vsel %vm470_vm1, %v458_v30, 0 }
 0x1e3   : > { %481 = vmatpush.bf16.msrb.mxu3 %v472_v31 }
 0x1e7   : > { %501 = vmatpush.bf16.msra.mxu3 %v492_v46 }
 0x254   : > { %v454_v32 = vpop.xlane.xlu0 %453 }
 0x255   : > { %813 = vrcp.f32 %v454_v32 }
 0x25b   : > { %v814_v33 = vpop.eup %813 }
 0x25c   : > { %v456_v35 = vmul.f32 0.125, %v814_v33 }
 0x25e   : > { %v457_v36 = vpack.c.bf16 %v456_v35, %v456_v35 }
 0x260   : > { %v460_v38 = vunpack.c.l.b16 %v457_v36 }
 0x262   : > { %v713_v39 = vunpack.i.l.s16 %v460_v38 }
 0x264   : > { %v465_v40 = vperm.slane %v713_v39, %v464_v37 }
 0x266   : > { %v466_v42 = vpack.c.b16 %v465_v40, %v465_v40 }
 0x268   : > { %714 = vmatmul.msk.bf16.vlgmr.msrb.gmra.mxu3 %vm445_vm0, %v466_v42 }
 0x2eb   : > { %v483_v48 = vpop.f32.mrf.mxu3 }
 0x2ec   : > { %v487_v49 = vpack.c.bf16 %v483_v48, %v483_v48 }
 0x2ee   : > { %715 = vmatmul.msk.bf16.vlgmr.msra.gmra.mxu3 %vm445_vm0, %v487_v49 }
 0x2f3   : > { %v485_v51 = vpop.f32.mrf.mxu3 }
 0x371   : > { %v503_v50 = vpop.f32.mrf.mxu3 }
 0x372   : > { %507 = vst [vmem:[%s217_s25] sm:$0x1] %v503_v50 }
 0x373   : > { %932 = shalt.err (!%p929_p9)
}
 0x374   : > { %752 = dma.vmem_to_hbm [thread:$0]  (%p1070_p4), %s520_s26, 16, %s522_s27, %s509_s28  }
 0x379   : > { %v505_v52 = vpop.f32.mrf.mxu3 }
 0x37a PF: > { %s533_s8 = sand.u32 1, %s963_s12   ;;  %p1176_p10 = scmp.ge.s32.totalorder %s975_s15, 2 }
 0x37b   : > { %s534_s10 = scalar_lea.sflag [#allocation4], %s533_s8 }
 0x37c   : > { %p766_p13 = pnand %p1176_p10, %p1074_p6 }
 0x37e   : > { %p767_p11 = pneg %p766_p13 }
 0x380   : > { %958 = dma.done.wait (%p767_p11), %s534_s10, 16  }
 0x381   : > { %960 = vsyncadd (%p767_p11), %s534_s10, 4294967280  ;;  %p17_p0 = scmp.ge.s32.totalorder %s1044_s4, 4   ;;  %s1177_s12 = smov %s967_s13 }
 0x382   : > { %s1178_s13 = smov %s971_s14  ;;  %s1179_s14 = smov %s1055_s7 }
 0x383   : > { %s1180_s15 = smov %s1044_s4  ;;  %19 = sbr.rel (!%p17_p0) target bundleno = 6 (0x6), region = 85 }
 0x388   :  { %539 = vsyncpa [#allocation3], 1 }
 0x389   :  { %541 = vsyncpa [#allocation3 + $0x1], 1 }
 0x38a   :  { %542 = vsyncpa [#allocation6], 1 }
 0x38b   :  { %543 = vsyncpa [#allocation4], 1 }
 0x38c   :  { %545 = vsyncpa [#allocation4 + $0x1], 1 }

</bundles_post_ra>
